<compile_context>
chip_gen: v7x
topology: tpu7x:2x2x1
jax: 0.10.0
libtpu: 0.0.40
codegen_flags: <defaults>
</compile_context>

<pallas_src>
import numpy as np
import jax
import jax.numpy as jnp
from jax.experimental import pallas as pl
from jax.experimental.pallas import tpu as pltpu


def _slow_indices(T, alpha):
    """Equivalent of torch.linspace(0, T-1, T // alpha).long()."""
    num = T // alpha
    if num <= 0:
        return np.zeros((0,), dtype=np.int64)
    # torch.linspace computes in float32; .long() truncates toward zero.
    return np.linspace(0.0, float(T - 1), num).astype(np.float32).astype(np.int64)


def temporal_gather(x, slow_idx):
    """x[:, slow_idx, :, :] via direct HBM->HBM DMAs (no VMEM staging)."""
    C, T, H, W = x.shape
    T_out = len(slow_idx)
    hw = H * W
    x_flat = x.reshape(C, T, hw)                 # free row-major merge
    itemsize = np.dtype(x.dtype).itemsize

    def kernel(x_hbm, slow_hbm, sems):
        copies = []
        for i, src_t in enumerate(slow_idx):
            copies.append(pltpu.make_async_copy(
                x_hbm.at[:, pl.ds(int(src_t), 1), :],
                slow_hbm.at[:, pl.ds(i, 1), :],
                sems.at[i],
            ))
        for cp in copies:
            cp.start()
        for cp in copies:
            cp.wait()

    out = pl.pallas_call(
        kernel,
        out_shape=jax.ShapeDtypeStruct((C, T_out, hw), x.dtype),
        in_specs=[pl.BlockSpec(memory_space=pl.ANY)],
        out_specs=pl.BlockSpec(memory_space=pl.ANY),
        scratch_shapes=[pltpu.SemaphoreType.DMA((T_out,))],
        cost_estimate=pl.CostEstimate(
            flops=0, transcendentals=0,
            bytes_accessed=2 * C * T_out * hw * itemsize),
    )(x_flat)
    return out.reshape(C, T_out, H, W)


def pack_pathway_reversed(x, slow_idx):
    """Fused channel-reverse + both pathways, all via direct HBM->HBM DMAs."""
    C, T, H, W = x.shape
    T_out = len(slow_idx)
    hw = H * W
    x_flat = x.reshape(C, T, hw)
    itemsize = np.dtype(x.dtype).itemsize

    def kernel(x_hbm, slow_hbm, fast_hbm, fast_sems, slow_sems):
        copies = []
        # Fast pathway: per-channel reversed full copy.
        for c in range(C):
            copies.append(pltpu.make_async_copy(
                x_hbm.at[pl.ds(c, 1), :, :],
                fast_hbm.at[pl.ds(C - 1 - c, 1), :, :],
                fast_sems.at[c],
            ))
        # Slow pathway: per-channel reversed temporal gather.
        for c in range(C):
            for i, src_t in enumerate(slow_idx):
                copies.append(pltpu.make_async_copy(
                    x_hbm.at[pl.ds(c, 1), pl.ds(int(src_t), 1), :],
                    slow_hbm.at[pl.ds(C - 1 - c, 1), pl.ds(i, 1), :],
                    slow_sems.at[c * T_out + i],
                ))
        for cp in copies:
            cp.start()
        for cp in copies:
            cp.wait()

    slow, fast = pl.pallas_call(
        kernel,
        out_shape=(jax.ShapeDtypeStruct((C, T_out, hw), x.dtype),
                   jax.ShapeDtypeStruct((C, T, hw), x.dtype)),
        in_specs=[pl.BlockSpec(memory_space=pl.ANY)],
        out_specs=(pl.BlockSpec(memory_space=pl.ANY),
                   pl.BlockSpec(memory_space=pl.ANY)),
        scratch_shapes=[pltpu.SemaphoreType.DMA((C,)),
                        pltpu.SemaphoreType.DMA((C * T_out,))],
        cost_estimate=pl.CostEstimate(
            flops=0, transcendentals=0,
            bytes_accessed=2 * C * (T + T_out) * hw * itemsize),
    )(x_flat)
    return slow.reshape(C, T_out, H, W), fast.reshape(C, T, H, W)


def pack_pathway_output(x, alpha, reverse_input_channel=False):
    """JAX/Pallas equivalent of SlowFast utils.pack_pathway_output.

    Args:
      x: video tensor (C, T, H, W)
      alpha: cfg.SLOWFAST.ALPHA (temporal stride ratio between pathways)
      reverse_input_channel: cfg.DATA.REVERSE_INPUT_CHANNEL

    Returns:
      [slow_pathway, fast_pathway]
    """
    C, T, H, W = x.shape
    slow_idx = _slow_indices(T, alpha)
    T_out = len(slow_idx)

    if T_out == 0:
        # Degenerate T < alpha: empty slow pathway; nothing to gather.
        fast = jnp.flip(x, axis=0) if reverse_input_channel else x
        return [jnp.zeros((C, 0, H, W), x.dtype), fast]

    if reverse_input_channel:
        slow, fast = pack_pathway_reversed(x, slow_idx)
        return [slow, fast]

    fast = x                                     # identity: no copy, no kernel
    slow = temporal_gather(x, slow_idx)
    return [slow, fast]


if __name__ == "__main__":
    key = jax.random.PRNGKey(0)
    # Small video: C=3 (RGB), T=8 frames, 16x16 spatial; SlowFast alpha=4.
    C, T, H, W = 3, 8, 16, 16
    alpha = 4
    x = jax.random.normal(key, (C, T, H, W), dtype=jnp.float32)

    slow, fast = pack_pathway_output(x, alpha, reverse_input_channel=False)
    slow = jax.block_until_ready(slow)
    fast = jax.block_until_ready(fast)

    # Reference check (pure JAX) for correctness of the Pallas gather.
    slow_idx = _slow_indices(T, alpha)
    ref_slow = jnp.take(x, jnp.asarray(slow_idx), axis=1)
    assert fast.shape == (C, T, H, W)
    assert slow.shape == (C, T // alpha, H, W)
    assert jnp.allclose(fast, x)
    assert jnp.allclose(slow, ref_slow)

    # Channel-reversed configuration (fused reverse + both pathways).
    slow_r, fast_r = pack_pathway_output(x, alpha, reverse_input_channel=True)
    slow_r = jax.block_until_ready(slow_r)
    fast_r = jax.block_until_ready(fast_r)
    x_rev = jnp.flip(x, axis=0)
    assert jnp.allclose(fast_r, x_rev)
    assert jnp.allclose(slow_r, jnp.take(x_rev, jnp.asarray(slow_idx), axis=1))

    # Odd spatial size (HW not a multiple of 128) exercises the shape-agnostic
    # DMA path that replaced the old masked-store fallback.
    x_odd = jax.random.normal(jax.random.PRNGKey(1), (3, 8, 15, 15), jnp.float32)
    slow_o, fast_o = pack_pathway_output(x_odd, alpha)
    slow_o = jax.block_until_ready(slow_o)
    assert jnp.allclose(slow_o, jnp.take(x_odd, jnp.asarray(slow_idx), axis=1))
    assert jnp.allclose(fast_o, x_odd)

    print("KERNEL_OK")
</pallas_src>

<mosaic_0001>
module attributes {stable_mosaic.version = 11 : i64} {
  func.func @kernel(%arg0: memref<3x8x256xf32, #tpu.memory_space<any>>, %arg1: memref<3x2x256xf32, #tpu.memory_space<any>>, %arg2: memref<2x!tpu.dma_semaphore, #tpu.memory_space<semaphore_mem>>) attributes {dimension_semantics = [], scalar_prefetch = 0 : i64, scratch_operands = 1 : i64, tpu.core_type = #tpu.core_type<tc>} {
    %c0_i32 = arith.constant 0 : i32
    %c0_i32_0 = arith.constant 0 : i32
    %c0_i32_1 = arith.constant 0 : i32
    %c0_i32_2 = arith.constant 0 : i32
    %0 = tpu.memref_slice %arg0[%c0_i32_0, %c0_i32_1, %c0_i32_2] : memref<3x8x256xf32, #tpu.memory_space<any>> -> memref<3x1x256xf32, #tpu.memory_space<any>>
    %c0_i32_3 = arith.constant 0 : i32
    %c0_i32_4 = arith.constant 0 : i32
    %c0_i32_5 = arith.constant 0 : i32
    %1 = tpu.memref_slice %arg1[%c0_i32_3, %c0_i32_4, %c0_i32_5] : memref<3x2x256xf32, #tpu.memory_space<any>> -> memref<3x1x256xf32, #tpu.memory_space<any>>
    %2 = tpu.memref_slice %arg2[%c0_i32] : memref<2x!tpu.dma_semaphore, #tpu.memory_space<semaphore_mem>> -> memref<1x!tpu.dma_semaphore, #tpu.memory_space<semaphore_mem>>
    %3 = tpu.memref_squeeze %2 : memref<1x!tpu.dma_semaphore, #tpu.memory_space<semaphore_mem>> -> memref<!tpu.dma_semaphore, #tpu.memory_space<semaphore_mem>>
    tpu.enqueue_dma source(%0 : memref<3x1x256xf32, #tpu.memory_space<any>>) target(%1 : memref<3x1x256xf32, #tpu.memory_space<any>>) target_semaphore(%3 : memref<!tpu.dma_semaphore, #tpu.memory_space<semaphore_mem>>)
    %c1_i32 = arith.constant 1 : i32
    %c0_i32_6 = arith.constant 0 : i32
    %c7_i32 = arith.constant 7 : i32
    %c0_i32_7 = arith.constant 0 : i32
    %4 = tpu.memref_slice %arg0[%c0_i32_6, %c7_i32, %c0_i32_7] : memref<3x8x256xf32, #tpu.memory_space<any>> -> memref<3x1x256xf32, #tpu.memory_space<any>>
    %c0_i32_8 = arith.constant 0 : i32
    %c1_i32_9 = arith.constant 1 : i32
    %c0_i32_10 = arith.constant 0 : i32
    %5 = tpu.memref_slice %arg1[%c0_i32_8, %c1_i32_9, %c0_i32_10] : memref<3x2x256xf32, #tpu.memory_space<any>> -> memref<3x1x256xf32, #tpu.memory_space<any>>
    %6 = tpu.memref_slice %arg2[%c1_i32] : memref<2x!tpu.dma_semaphore, #tpu.memory_space<semaphore_mem>> -> memref<1x!tpu.dma_semaphore, #tpu.memory_space<semaphore_mem>>
    %7 = tpu.memref_squeeze %6 : memref<1x!tpu.dma_semaphore, #tpu.memory_space<semaphore_mem>> -> memref<!tpu.dma_semaphore, #tpu.memory_space<semaphore_mem>>
    tpu.enqueue_dma source(%4 : memref<3x1x256xf32, #tpu.memory_space<any>>) target(%5 : memref<3x1x256xf32, #tpu.memory_space<any>>) target_semaphore(%7 : memref<!tpu.dma_semaphore, #tpu.memory_space<semaphore_mem>>)
    %c0_i32_11 = arith.constant 0 : i32
    %c0_i32_12 = arith.constant 0 : i32
    %c0_i32_13 = arith.constant 0 : i32
    %c0_i32_14 = arith.constant 0 : i32
    %8 = tpu.memref_slice %arg0[%c0_i32_12, %c0_i32_13, %c0_i32_14] : memref<3x8x256xf32, #tpu.memory_space<any>> -> memref<3x1x256xf32, #tpu.memory_space<any>>
    %c0_i32_15 = arith.constant 0 : i32
    %c0_i32_16 = arith.constant 0 : i32
    %c0_i32_17 = arith.constant 0 : i32
    %9 = tpu.memref_slice %arg1[%c0_i32_15, %c0_i32_16, %c0_i32_17] : memref<3x2x256xf32, #tpu.memory_space<any>> -> memref<3x1x256xf32, #tpu.memory_space<any>>
    %10 = tpu.memref_slice %arg2[%c0_i32_11] : memref<2x!tpu.dma_semaphore, #tpu.memory_space<semaphore_mem>> -> memref<1x!tpu.dma_semaphore, #tpu.memory_space<semaphore_mem>>
    %11 = tpu.memref_squeeze %10 : memref<1x!tpu.dma_semaphore, #tpu.memory_space<semaphore_mem>> -> memref<!tpu.dma_semaphore, #tpu.memory_space<semaphore_mem>>
    tpu.wait_dma2 semaphore(%11 : memref<!tpu.dma_semaphore, #tpu.memory_space<semaphore_mem>>) src(%8 : memref<3x1x256xf32, #tpu.memory_space<any>>) dst(%9 : memref<3x1x256xf32, #tpu.memory_space<any>>)
    %c1_i32_18 = arith.constant 1 : i32
    %c0_i32_19 = arith.constant 0 : i32
    %c7_i32_20 = arith.constant 7 : i32
    %c0_i32_21 = arith.constant 0 : i32
    %12 = tpu.memref_slice %arg0[%c0_i32_19, %c7_i32_20, %c0_i32_21] : memref<3x8x256xf32, #tpu.memory_space<any>> -> memref<3x1x256xf32, #tpu.memory_space<any>>
    %c0_i32_22 = arith.constant 0 : i32
    %c1_i32_23 = arith.constant 1 : i32
    %c0_i32_24 = arith.constant 0 : i32
    %13 = tpu.memref_slice %arg1[%c0_i32_22, %c1_i32_23, %c0_i32_24] : memref<3x2x256xf32, #tpu.memory_space<any>> -> memref<3x1x256xf32, #tpu.memory_space<any>>
    %14 = tpu.memref_slice %arg2[%c1_i32_18] : memref<2x!tpu.dma_semaphore, #tpu.memory_space<semaphore_mem>> -> memref<1x!tpu.dma_semaphore, #tpu.memory_space<semaphore_mem>>
    %15 = tpu.memref_squeeze %14 : memref<1x!tpu.dma_semaphore, #tpu.memory_space<semaphore_mem>> -> memref<!tpu.dma_semaphore, #tpu.memory_space<semaphore_mem>>
    tpu.wait_dma2 semaphore(%15 : memref<!tpu.dma_semaphore, #tpu.memory_space<semaphore_mem>>) src(%12 : memref<3x1x256xf32, #tpu.memory_space<any>>) dst(%13 : memref<3x1x256xf32, #tpu.memory_space<any>>)
    return
  }
}

</mosaic_0001>

<bundles_post_ra>
// kernel: tpu_custom_call.1
= control target key start
LH: loop header
LB: loop body
LE: loop exit
PB: predicated region body
PF: predicated region fallthrough
CT: control target
= control target key end

     0   :  { %s80_s6 = smov 128   ;;  %s81_s7 = smov 32   ;;  %s110_s0 = inlined_call_operand.hbm [shape: f32[3,8,256], index: 0, kind: input, shape index: {}]   ;;  %s111_s1 = inlined_call_operand.hbm [shape: f32[3,2,256], index: 1, kind: output, shape index: {}]  }
   0x1   :  { %18 = sst [smem:[#allocation4]] %s80_s6  ;;  %s82_s8 = smov 1  }
   0x2   :  { %20 = sst [smem:[#allocation4 + $0x1]] %s81_s7  ;;  %s25_s11 = scalar_lea.hbm %s110_s0, 112 }
   0x3   :  { %22 = sst [smem:[#allocation4 + $0x2]] %s82_s8  ;;  %s83_s12 = smov [#allocation2]  }
   0x4   :  { %s84_s13 = smov [#allocation3]   ;;  %s85_s14 = smov 0  }
   0x5   :  { %24 = dma.general %s110_s0, 96, %s111_s1, %s83_s12, %s84_s13, [#allocation4], %s85_s14, 0  }
   0x6   :  { %40 = sst [smem:[#allocation6]] %s80_s6  ;;  %s26_s21 = scalar_lea.hbm %s111_s1, 16 }
   0x7   :  { %42 = sst [smem:[#allocation6 + $0x1]] %s81_s7  ;;  %s86_s22 = smov [#allocation2 + $0x1]  }
   0x8   :  { %44 = sst [smem:[#allocation6 + $0x2]] %s82_s8  ;;  %s87_s23 = smov [#allocation5]  }
   0x9   :  { %46 = dma.general %s25_s11, 96, %s26_s21, %s86_s22, %s87_s23, [#allocation6], %s85_s14, 0  }
   0xa   :  { %76 = dma.done.wait [#allocation2], 96 }
   0xb   :  { %77 = vsyncadd [#allocation2], 4294967200 }
   0xc   :  { %78 = dma.done.wait [#allocation2 + $0x1], 96 }
   0xd   :  { %79 = vsyncadd [#allocation2 + $0x1], 4294967200 }
   0xe   :  { %53 = vsyncmov [#allocation2] }
  0x11   :  { %s54_s24 = vpop.sfrf %53 }
  0x12   :  { %p66_p0 = scmp.ne.s32.totalorder %s54_s24, 0 }
  0x14   :  { %58 = shalt.err (%p66_p0)  }
  0x15   :  { %60 = vsyncmov [#allocation2 + $0x1] }
  0x18   :  { %s61_s0 = vpop.sfrf %60 }
  0x19   :  { %p67_p1 = scmp.ne.s32.totalorder %s61_s0, 0 }
  0x1b   :  { %65 = shalt.err (%p67_p1)  }

</bundles_post_ra>
